<compile_context>
chip_gen: v7x
topology: tpu7x:2x2x1
jax: 0.10.0
libtpu: 0.0.40
codegen_flags: <defaults>
</compile_context>

<pallas_src>
import math

import numpy as np
import jax
import jax.numpy as jnp
from jax.experimental import pallas as pl
from jax.experimental.pallas import tpu as pltpu


def custom_vit_embeddings_forward(pixel_values,
                                  bool_masked_pos=None,
                                  interpolate_pos_encoding=False):
    """Optimal path: forward() is an identity, so emit no kernel at all.

    bool_masked_pos / interpolate_pos_encoding are ignored, matching the
    reference forward which never touches them.
    """
    return pixel_values


def _dma_copy_kernel(x_hbm_ref, o_hbm_ref, sem):
    # Single direct HBM->HBM DMA of the whole array.  No VMEM staging, no
    # vector load/store, no tiling constraints.
    copy = pltpu.make_async_copy(x_hbm_ref, o_hbm_ref, sem)
    copy.start()
    copy.wait()


def custom_vit_embeddings_forward_materialized(pixel_values,
                                               bool_masked_pos=None,
                                               interpolate_pos_encoding=False,
                                               *, donate=False):
    """Identity forward that (optionally) materializes a fresh output buffer.

    donate=True means the caller does not need a distinct output buffer, so we
    skip the kernel entirely and return the input (identical observable result
    to an aliased identity copy, with zero HBM traffic).
    """
    if donate:
        return pixel_values

    shape = tuple(int(d) for d in pixel_values.shape)
    dtype = pixel_values.dtype
    total = math.prod(shape) if shape else 1
    nbytes = total * jnp.dtype(dtype).itemsize

    return pl.pallas_call(
        _dma_copy_kernel,
        out_shape=jax.ShapeDtypeStruct(shape, dtype),
        in_specs=[pl.BlockSpec(memory_space=pl.ANY)],
        out_specs=pl.BlockSpec(memory_space=pl.ANY),
        scratch_shapes=[pltpu.SemaphoreType.DMA(())],
        cost_estimate=pl.CostEstimate(
            flops=0, transcendentals=0, bytes_accessed=2 * nbytes),
    )(pixel_values)


if __name__ == "__main__":
    key = jax.random.PRNGKey(0)
    # Small NCHW pixel values, consistent with the module's forward signature.
    B, C, H, W = 2, 4, 16, 16
    pixel_values = jax.random.normal(key, (B, C, H, W), dtype=jnp.float32)
    pv_np = np.asarray(jax.block_until_ready(pixel_values))

    # 1) Optimal path: identity passthrough, no kernel, no HBM traffic.
    out_fast = jax.block_until_ready(
        custom_vit_embeddings_forward(pixel_values))
    assert out_fast.shape == pixel_values.shape
    assert out_fast.dtype == pixel_values.dtype
    assert np.array_equal(np.asarray(out_fast), pv_np)

    # 2) Materialized path: single HBM->HBM DMA into a fresh buffer.
    out_copy = jax.block_until_ready(
        custom_vit_embeddings_forward_materialized(pixel_values))
    assert out_copy.shape == pixel_values.shape
    assert out_copy.dtype == pixel_values.dtype
    assert np.array_equal(np.asarray(out_copy), pv_np)

    # 3) donate=True collapses to the identity path (no kernel).
    out_alias = jax.block_until_ready(
        custom_vit_embeddings_forward_materialized(pixel_values, donate=True))
    assert out_alias.shape == pixel_values.shape
    assert out_alias.dtype == pixel_values.dtype
    assert np.array_equal(np.asarray(out_alias), pv_np)

    # 4) The DMA path has no layout constraints: non-128-divisible shape.
    odd = jax.random.normal(jax.random.PRNGKey(1), (3, 5, 7), jnp.float32)
    odd_np = np.asarray(jax.block_until_ready(odd))
    out_odd = jax.block_until_ready(
        custom_vit_embeddings_forward_materialized(odd))
    assert out_odd.shape == odd.shape and out_odd.dtype == odd.dtype
    assert np.array_equal(np.asarray(out_odd), odd_np)

    # 5) Packed dtype (bf16) — DMA copy is dtype-agnostic.
    pv_bf16 = pixel_values.astype(jnp.bfloat16)
    bf16_np = np.asarray(jax.block_until_ready(pv_bf16))
    out_bf16 = jax.block_until_ready(
        custom_vit_embeddings_forward_materialized(pv_bf16))
    assert out_bf16.shape == pv_bf16.shape and out_bf16.dtype == pv_bf16.dtype
    assert np.array_equal(np.asarray(out_bf16), bf16_np)

    print("KERNEL_OK")
</pallas_src>

<mosaic_0001>
module attributes {stable_mosaic.version = 11 : i64} {
  func.func @_dma_copy_kernel(%arg0: memref<2x4x16x16xf32, #tpu.memory_space<any>>, %arg1: memref<2x4x16x16xf32, #tpu.memory_space<any>>, %arg2: memref<!tpu.dma_semaphore, #tpu.memory_space<semaphore_mem>>) attributes {dimension_semantics = [], scalar_prefetch = 0 : i64, scratch_operands = 1 : i64, tpu.core_type = #tpu.core_type<tc>} {
    tpu.enqueue_dma source(%arg0 : memref<2x4x16x16xf32, #tpu.memory_space<any>>) target(%arg1 : memref<2x4x16x16xf32, #tpu.memory_space<any>>) target_semaphore(%arg2 : memref<!tpu.dma_semaphore, #tpu.memory_space<semaphore_mem>>)
    tpu.wait_dma2 semaphore(%arg2 : memref<!tpu.dma_semaphore, #tpu.memory_space<semaphore_mem>>) src(%arg0 : memref<2x4x16x16xf32, #tpu.memory_space<any>>) dst(%arg1 : memref<2x4x16x16xf32, #tpu.memory_space<any>>)
    return
  }
}

</mosaic_0001>

<bundles_post_ra>
// kernel: tpu_custom_call.1
= control target key start
LH: loop header
LB: loop body
LE: loop exit
PB: predicated region body
PF: predicated region fallthrough
CT: control target
= control target key end

     0   :  { %s36_s6 = smov [#allocation2]   ;;  %s37_s7 = smov [#allocation3]   ;;  %s55_s0 = inlined_call_operand.hbm [shape: f32[2,4,16,16], index: 0, kind: input, shape index: {}]   ;;  %s56_s1 = inlined_call_operand.hbm [shape: f32[2,4,16,16], index: 1, kind: output, shape index: {}]  }
   0x1   :  { %s38_s8 = smov 0  }
   0x2   :  { %18 = dma.general %s55_s0, 2048, %s56_s1, %s36_s6, %s37_s7, [#allocation4], %s38_s8, 0  }
   0x3   :  { %34 = dma.done.wait [#allocation2], 2048 }
   0x4   :  { %35 = vsyncadd [#allocation2], 4294965248 }
   0x5   :  { %24 = vsyncmov [#allocation2] }
   0x8   :  { %s25_s13 = vpop.sfrf %24 }
   0x9   :  { %p30_p0 = scmp.ne.s32.totalorder %s25_s13, 0 }
   0xb   :  { %29 = shalt.err (%p30_p0)  }

</bundles_post_ra>
